<compile_context>
chip_gen: v5e
topology: v5e:2x2
jax: 0.10.0
libtpu: 0.0.40
codegen_flags: <defaults>
</compile_context>

<pallas_src>
import functools

import jax
import jax.numpy as jnp
from jax import lax
from jax.experimental import pallas as pl
from jax.experimental.pallas import tpu as pltpu

_MIB = 1024 * 1024


def _round_up(x, m):
    return (x + m - 1) // m * m


def _vmem_capacity_bytes():
    """Per-core VMEM capacity; conservative (v7x-sized) fallback on failure."""
    try:
        cap = getattr(pltpu.get_tpu_info(), "vmem_capacity_bytes", None)
        if cap:
            return int(cap)
    except Exception:
        pass
    return 64 * _MIB


# ---------------- kernel 1: row-tiled L2 normalize (multi-tile path) --------

def _normalize_kernel(f_ref, o_ref):
    # F.normalize(features, p=2, dim=1): x * rsqrt(max(||x||^2, eps^2)).
    # Elementwise math in f32 (rsqrt -> EUP); MXU dtype cast only on store.
    f = f_ref[...].astype(jnp.float32)
    ssq = jnp.sum(f * f, axis=1, keepdims=True)
    o_ref[...] = (f * lax.rsqrt(jnp.maximum(ssq, 1e-24))).astype(o_ref.dtype)


# ---------- kernel 2a: fused normalize + masked gram (single-tile path) -----

def _opl_fused_kernel(f_ref, lcol_ref, lrow_ref, out_ref, *, mm_dtype):
    f = f_ref[...].astype(jnp.float32)
    ssq = jnp.sum(f * f, axis=1, keepdims=True)
    fn = (f * lax.rsqrt(jnp.maximum(ssq, 1e-24))).astype(mm_dtype)
    # fn @ fn.T via NT-form dot_general (same pattern as flash-attn q@k.T),
    # f32 accumulation on the MXU.
    dot = lax.dot_general(fn, fn,
                          dimension_numbers=(((1,), (1,)), ((), ())),
                          preferred_element_type=jnp.float32)
    lab_r = lcol_ref[...]                                     # (B, 1) int32
    lab_c = lrow_ref[...]                                     # (1, B) int32
    neg = jnp.logical_and(lab_r != lab_c,
                          jnp.logical_and(lab_r >= 0, lab_c >= 0))
    out_ref[0, 0] = jnp.sum(jnp.where(neg, dot, jnp.float32(0.0)))


# ------- kernel 2b: triangular tiled masked-gram reduction (multi-tile) -----

def _opl_tri_kernel(i_tab_ref, j_tab_ref, fr_ref, fc_ref, lcol_ref, lrow_ref,
                    out_ref, sum_ref):
    t = pl.program_id(0)

    @pl.when(t == 0)
    def _init():
        sum_ref[0] = jnp.float32(0.0)

    dot = lax.dot_general(fr_ref[...], fc_ref[...],
                          dimension_numbers=(((1,), (1,)), ((), ())),
                          preferred_element_type=jnp.float32)  # (TB, TB) f32
    lab_r = lcol_ref[...]                                     # (TB, 1) int32
    lab_c = lrow_ref[...]                                     # (1, TB) int32
    neg = jnp.logical_and(lab_r != lab_c,
                          jnp.logical_and(lab_r >= 0, lab_c >= 0))
    part = jnp.sum(jnp.where(neg, dot, jnp.float32(0.0)))
    # Only j >= i tile pairs are visited; off-diagonal tiles count twice.
    w = jnp.where(i_tab_ref[t] == j_tab_ref[t],
                  jnp.float32(1.0), jnp.float32(2.0))
    sum_ref[0] += w * part

    @pl.when(t == pl.num_programs(0) - 1)
    def _fin():
        out_ref[0, 0] = sum_ref[0]


# ------------------------------- wrapper ------------------------------------

def orthogonal_projection_loss(features, labels, gamma=0.5, block_b=None,
                               cast_to_bf16=True):
    """features: [B, D] float, labels: [B] int -> scalar f32 loss
    (== gamma * neg_pairs_mean of the PyTorch module)."""
    B, D = features.shape
    labels = labels.astype(jnp.int32)

    vmem_cap = _vmem_capacity_bytes()
    budget = min(int(vmem_cap * 0.6), 96 * _MIB)

    # MXU operand dtype; normalize / mask math stays f32 everywhere.
    if features.dtype == jnp.bfloat16 or cast_to_bf16:
        mm_dtype = jnp.bfloat16
    else:
        mm_dtype = jnp.float32
    mm_size = jnp.dtype(mm_dtype).itemsize

    # Neg-pair count is D-independent: compute it from labels in the wrapper
    # (drops one (TB,TB) cross-lane reduce per tile in the kernel).
    cnt = jnp.sum(labels[:, None] != labels[None, :], dtype=jnp.float32)

    if block_b is None:
        # Bigger tiles on 128 MiB VMEM chips (v5e/v6e); 512 on 64 MiB v7x.
        block_b = 1024 if vmem_cap >= 96 * _MIB else 512
    block_b = max(128, _round_up(block_b, 128))

    if B <= block_b:
        # ---- single-tile fused path: normalize + masked gram in one launch --
        b_pad = max(_round_up(B, 8), 8)
        pad = b_pad - B
        f = jnp.pad(features, ((0, pad), (0, 0)))
        lab = jnp.pad(labels, ((0, pad),), constant_values=-1)
        footprint = (2 * b_pad * D * 4 + b_pad * D * mm_size
                     + 3 * b_pad * b_pad * 4)
        vmem_limit = int(min(max(footprint * 3 // 2, 16 * _MIB),
                             int(vmem_cap * 0.75)))
        s = pl.pallas_call(
            functools.partial(_opl_fused_kernel, mm_dtype=mm_dtype),
            out_shape=jax.ShapeDtypeStruct((1, 1), jnp.float32),
            grid=(1,),
            in_specs=[
                pl.BlockSpec((b_pad, D), lambda i: (0, 0)),
                pl.BlockSpec((b_pad, 1), lambda i: (0, 0)),
                pl.BlockSpec((1, b_pad), lambda i: (0, 0)),
            ],
            out_specs=pl.BlockSpec((1, 1), lambda i: (0, 0),
                                   memory_space=pltpu.SMEM),
            compiler_params=pltpu.CompilerParams(
                dimension_semantics=("arbitrary",),
                vmem_limit_bytes=vmem_limit),
        )(f, lab.reshape(b_pad, 1), lab.reshape(1, b_pad))
        total = s[0, 0]
    else:
        # ---- multi-tile path -------------------------------------------------
        tb = block_b

        def k2_footprint(t_):
            # double-buffered row+col feature tiles + gram/mask temporaries
            return 2 * 2 * t_ * D * mm_size + 3 * t_ * t_ * 4 + 64 * 1024

        while (tb > 256 and tb % 2 == 0 and (tb // 2) % 128 == 0
               and k2_footprint(tb) > budget):
            tb //= 2

        b_pad = _round_up(B, tb)
        n = b_pad // tb
        pad = b_pad - B
        f = jnp.pad(features, ((0, pad), (0, 0)))
        lab = jnp.pad(labels, ((0, pad),), constant_values=-1)

        # kernel 1: streaming normalize with its own (smaller) row tile.
        tb1 = tb
        while (tb1 > 8 and tb1 % 2 == 0 and (tb1 // 2) % 8 == 0
               and 2 * tb1 * D * (4 + mm_size) > 16 * _MIB):
            tb1 //= 2
        k1_limit = int(min(max(4 * tb1 * D * (4 + mm_size), 16 * _MIB),
                           int(vmem_cap * 0.75)))
        fn = pl.pallas_call(
            _normalize_kernel,
            out_shape=jax.ShapeDtypeStruct((b_pad, D), mm_dtype),
            grid=(b_pad // tb1,),
            in_specs=[pl.BlockSpec((tb1, D), lambda i: (i, 0))],
            out_specs=pl.BlockSpec((tb1, D), lambda i: (i, 0)),
            compiler_params=pltpu.CompilerParams(
                dimension_semantics=("parallel",),
                vmem_limit_bytes=k1_limit),
        )(f)

        # kernel 2: triangular sweep over tile pairs (j >= i only), driven by
        # scalar-prefetch index tables -> lower-triangular tiles never DMA'd.
        i_list, j_list = [], []
        for i in range(n):
            for j in range(i, n):
                i_list.append(i)
                j_list.append(j)
        i_tab = jnp.asarray(i_list, dtype=jnp.int32)
        j_tab = jnp.asarray(j_list, dtype=jnp.int32)
        n_steps = len(i_list)

        k2_limit = int(min(max(k2_footprint(tb) * 3 // 2, 16 * _MIB),
                           int(vmem_cap * 0.75)))
        grid_spec = pltpu.PrefetchScalarGridSpec(
            num_scalar_prefetch=2,
            grid=(n_steps,),
            in_specs=[
                pl.BlockSpec((tb, D), lambda t, it, jt: (it[t], 0)),  # row tile
                pl.BlockSpec((tb, D), lambda t, it, jt: (jt[t], 0)),  # col tile
                pl.BlockSpec((tb, 1), lambda t, it, jt: (it[t], 0)),  # row labels
                pl.BlockSpec((1, tb), lambda t, it, jt: (0, jt[t])),  # col labels
            ],
            out_specs=pl.BlockSpec((1, 1), lambda t, it, jt: (0, 0),
                                   memory_space=pltpu.SMEM),
            scratch_shapes=[pltpu.SMEM((1,), jnp.float32)],
        )
        s = pl.pallas_call(
            _opl_tri_kernel,
            out_shape=jax.ShapeDtypeStruct((1, 1), jnp.float32),
            grid_spec=grid_spec,
            compiler_params=pltpu.CompilerParams(
                dimension_semantics=("arbitrary",),
                vmem_limit_bytes=k2_limit),
        )(i_tab, j_tab, fn, fn, lab.reshape(b_pad, 1), lab.reshape(1, b_pad))
        total = s[0, 0]

    # gamma * neg_pairs_mean, with the +1e-6 denominator of the reference.
    return jnp.float32(gamma) * total / (cnt + jnp.float32(1e-6))


if __name__ == "__main__":
    def reference(features, labels, gamma=0.5):
        fn = features / jnp.maximum(
            jnp.sqrt(jnp.sum(features * features, axis=1, keepdims=True)), 1e-12)
        dot = fn @ fn.T
        neg = (labels[:, None] != labels[None, :]).astype(jnp.float32)
        return gamma * (jnp.sum(neg * dot) / (jnp.sum(neg) + 1e-6))

    key = jax.random.PRNGKey(0)
    kf, kl = jax.random.split(key)

    # Case 1: small batch -> single fused tile (B=8, D=32).
    B, D = 8, 32
    features = jax.random.normal(kf, (B, D), dtype=jnp.float32)
    labels = jax.random.randint(kl, (B,), 0, 3, dtype=jnp.int32)
    ref = reference(features, labels, gamma=0.5)

    loss_f32 = orthogonal_projection_loss(features, labels, gamma=0.5,
                                          cast_to_bf16=False)
    jax.block_until_ready(loss_f32)
    assert jnp.allclose(loss_f32, ref, atol=1e-4, rtol=1e-4), (loss_f32, ref)

    loss_bf16 = orthogonal_projection_loss(features, labels, gamma=0.5)
    jax.block_until_ready(loss_bf16)
    assert jnp.allclose(loss_bf16, ref, atol=1e-2, rtol=1e-2), (loss_bf16, ref)

    # Case 2: multi-tile triangular path (B=640, tb=256 -> 3x3 upper triangle,
    # 6 grid steps, padded rows carry label -1 / zero features).
    kf2, kl2 = jax.random.split(jax.random.PRNGKey(1))
    B2, D2 = 640, 32
    features2 = jax.random.normal(kf2, (B2, D2), dtype=jnp.float32)
    labels2 = jax.random.randint(kl2, (B2,), 0, 5, dtype=jnp.int32)
    ref2 = reference(features2, labels2, gamma=0.5)

    loss2_f32 = orthogonal_projection_loss(features2, labels2, gamma=0.5,
                                           block_b=256, cast_to_bf16=False)
    jax.block_until_ready(loss2_f32)
    assert jnp.allclose(loss2_f32, ref2, atol=1e-4, rtol=1e-4), (loss2_f32, ref2)

    loss2_bf16 = orthogonal_projection_loss(features2, labels2, gamma=0.5,
                                            block_b=256)
    jax.block_until_ready(loss2_bf16)
    assert jnp.allclose(loss2_bf16, ref2, atol=1e-2, rtol=1e-2), (loss2_bf16, ref2)

    print("KERNEL_OK")
</pallas_src>

<mosaic_0001>
module attributes {stable_mosaic.version = 11 : i64} {
  func.func @_opl_fused_kernel(%arg0: i32, %arg1: memref<8x32xf32, #tpu.memory_space<vmem>>, %arg2: memref<8x1xi32, #tpu.memory_space<vmem>>, %arg3: memref<1x8xi32, #tpu.memory_space<vmem>>, %arg4: memref<1x1xf32, #tpu.memory_space<smem>>) attributes {dimension_semantics = [#tpu.dimension_semantics<arbitrary>], iteration_bounds = array<i64: 1>, scalar_prefetch = 0 : i64, scratch_operands = 0 : i64, tpu.core_type = #tpu.core_type<tc>, window_params = [{pipeline_mode = #tpu.pipeline_mode<synchronous>, transform_indices = @transform_0, window_bounds = array<i64: 8, 32>}, {pipeline_mode = #tpu.pipeline_mode<synchronous>, transform_indices = @transform_1, window_bounds = array<i64: 8, 1>}, {pipeline_mode = #tpu.pipeline_mode<synchronous>, transform_indices = @transform_2, window_bounds = array<i64: 1, 8>}, {transform_indices = @transform_3, window_bounds = array<i64: 1, 1>}]} {
    %c0 = arith.constant 0 : index
    %c0_0 = arith.constant 0 : index
    %0 = vector.load %arg1[%c0, %c0_0] : memref<8x32xf32, #tpu.memory_space<vmem>>, vector<8x32xf32>
    %1 = arith.mulf %0, %0 : vector<8x32xf32>
    %cst = arith.constant dense<0.000000e+00> : vector<8xf32>
    %2 = vector.multi_reduction <add>, %1, %cst [1] : vector<8x32xf32> to vector<8xf32>
    %3 = vector.shape_cast %2 : vector<8xf32> to vector<8x1xf32>
    %cst_1 = arith.constant 1.000000e-24 : f32
    %4 = vector.broadcast %cst_1 : f32 to vector<8x1xf32>
    %5 = arith.maximumf %3, %4 : vector<8x1xf32>
    %6 = math.rsqrt %5 : vector<8x1xf32>
    %7 = vector.broadcast %6 : vector<8x1xf32> to vector<8x32xf32>
    %8 = arith.mulf %0, %7 : vector<8x32xf32>
    %cst_2 = arith.constant dense<0.000000e+00> : vector<8x8xf32>
    %9 = tpu.matmul %8, %8, %cst_2 {dimension_numbers = #tpu.dot_dimension_numbers<[1], [1], [0], [0], [0, 0, 1, 0], [], []>} : vector<8x32xf32>, vector<8x32xf32>, vector<8x8xf32> -> vector<8x8xf32>
    %c0_3 = arith.constant 0 : index
    %c0_4 = arith.constant 0 : index
    %10 = vector.load %arg2[%c0_3, %c0_4] : memref<8x1xi32, #tpu.memory_space<vmem>>, vector<8x1xi32>
    %c0_5 = arith.constant 0 : index
    %c0_6 = arith.constant 0 : index
    %11 = vector.load %arg3[%c0_5, %c0_6] : memref<1x8xi32, #tpu.memory_space<vmem>>, vector<1x8xi32>
    %12 = vector.broadcast %10 : vector<8x1xi32> to vector<8x8xi32>
    %13 = vector.broadcast %11 : vector<1x8xi32> to vector<8x8xi32>
    %14 = arith.cmpi ne, %12, %13 : vector<8x8xi32>
    %c0_i32 = arith.constant 0 : i32
    %15 = vector.broadcast %c0_i32 : i32 to vector<8x1xi32>
    %16 = arith.cmpi sge, %10, %15 : vector<8x1xi32>
    %c0_i32_7 = arith.constant 0 : i32
    %17 = vector.broadcast %c0_i32_7 : i32 to vector<1x8xi32>
    %18 = arith.cmpi sge, %11, %17 : vector<1x8xi32>
    %19 = vector.broadcast %16 : vector<8x1xi1> to vector<8x8xi1>
    %20 = vector.broadcast %18 : vector<1x8xi1> to vector<8x8xi1>
    %21 = arith.andi %19, %20 : vector<8x8xi1>
    %22 = arith.andi %14, %21 : vector<8x8xi1>
    %cst_8 = arith.constant 0.000000e+00 : f32
    %23 = vector.broadcast %cst_8 : f32 to vector<8x8xf32>
    %24 = arith.select %22, %9, %23 : vector<8x8xi1>, vector<8x8xf32>
    %25 = vector.shape_cast %24 : vector<8x8xf32> to vector<1x8x8xf32>
    %cst_9 = arith.constant dense<0.000000e+00> : vector<1xf32>
    %26 = vector.multi_reduction <add>, %25, %cst_9 [1, 2] : vector<1x8x8xf32> to vector<1xf32>
    %27 = vector.shape_cast %26 : vector<1xf32> to vector<1x1x1xf32>
    %28 = vector.extract %27[0, 0, 0] : f32 from vector<1x1x1xf32>
    %c0_10 = arith.constant 0 : index
    %c0_11 = arith.constant 0 : index
    %29 = memref.load %arg4[%c0_10, %c0_11] : memref<1x1xf32, #tpu.memory_space<smem>>
    memref.store %28, %arg4[%c0_10, %c0_11] : memref<1x1xf32, #tpu.memory_space<smem>>
    return
  }
  func.func @transform_0(%arg0: i32) -> (i32, i32) {
    %c0_i32 = arith.constant 0 : i32
    %c0_i32_0 = arith.constant 0 : i32
    %c0_i32_1 = arith.constant 0 : i32
    return %c0_i32, %c0_i32_0 : i32, i32
  }
  func.func @transform_1(%arg0: i32) -> (i32, i32) {
    %c0_i32 = arith.constant 0 : i32
    %c0_i32_0 = arith.constant 0 : i32
    %c0_i32_1 = arith.constant 0 : i32
    return %c0_i32, %c0_i32_0 : i32, i32
  }
  func.func @transform_2(%arg0: i32) -> (i32, i32) {
    %c0_i32 = arith.constant 0 : i32
    %c0_i32_0 = arith.constant 0 : i32
    %c0_i32_1 = arith.constant 0 : i32
    return %c0_i32, %c0_i32_0 : i32, i32
  }
  func.func @transform_3(%arg0: i32) -> (i32, i32) {
    %c0_i32 = arith.constant 0 : i32
    %c0_i32_0 = arith.constant 0 : i32
    %c0_i32_1 = arith.constant 0 : i32
    return %c0_i32, %c0_i32_0 : i32, i32
  }
}

</mosaic_0001>

<bundles_post_ra>
// kernel: tpu_custom_call.1
= control target key start
LH: loop header
LB: loop body
LE: loop exit
PB: predicated region body
PF: predicated region fallthrough
CT: control target
= control target key end

     0   :  { %vm17_vm0 = vcmask 261120   ;;  %s169_s0 = inlined_call_operand.vmem [shape: f32[8,32], index: 0, kind: input, shape index: {}]   ;;  %s170_s1 = inlined_call_operand.vmem [shape: s32[8,1], index: 1, kind: input, shape index: {}]   ;;  %s171_s2 = inlined_call_operand.vmem [shape: s32[1,8], index: 2, kind: input, shape index: {}]   ;;  %s172_s3 = inlined_call_operand.hbm [shape: f32[1,1], index: 3, kind: output, shape index: {}]  }
   0x1   :  { %v15_v0 = vld [vmem:[%s169_s0] sm:$0xff] }
   0x2   :  { %8 = vsyncpa [#allocation3], 0  ;;  %v16_v1 = vmul.f32 %v15_v0, %v15_v0  ;;  %v56_v3 = vld [vmem:[%s170_s1] sm:$0xff]  ;;  %v129_v4 = vmov 0   ;;  %vm76_vm11 = vcmask 64512   ;;  %s94_s19 = sshll.u32 %s172_s3, 4  ;;  %s95_s19 = int_to_ptr.hbm [resolvable:$true] %s94_s19 }
   0x3   :  { %110 = vset.pattern.permute.xlu0 %v129_v4  ;;  %111 = vset.pattern.permute.xlu1 %v129_v4  ;;  %vm63_vm1 = vcmp.ge.s32.totalorder %v56_v3, 0  ;;  %v57_v16 = vld [vmem:[%s171_s2] sm:$0x1]  ;;  %s130_s21 = smov [#allocation2]  }
   0x4   :  { %v18_v2 = vsel %vm17_vm0, %v16_v1, 0.0  ;;  %v65_v5 = vsel %vm63_vm1, 1, %v129_v4  ;;  %59 = vperm.xlu1 %111, %v56_v3   ;;  %vm64_vm5 = vcmp.ge.s32.totalorder %v57_v16, 0  ;;  %v112_v20 = vld [vmem:[%s171_s2] ss:$0 sm:$0xff] }
   0x5   :  { %19 = vadd.xlane.f32.xlu0 %v18_v2  ;;  %v70_v17 = vsel %vm64_vm5, 1, %v129_v4 }
   0x6   :  { %v71_v18 = vperm.slane %v70_v17, 0 }
   0x8   :  { %vm72_vm6 = vcmp.eq.s32.totalorder %v71_v18, 1 }
  0x19   :  { %67 = vperm.xlu0 %110, %v65_v5  }
  0x76   :  { %v60_v21 = vpop.permute.xlu1 %59 }
  0x77   :  { %vm62_vm9 = vcmp.ne.s32.totalorder %v60_v21, %v112_v20 }
  0x78   :  { %v20_v6 = vpop.xlane.xlu0 %19 }
  0x79   :  { %v21_v7 = vmax.f32 %v20_v6, 1e-24 }
  0x7b   :  { %113 = vrsqrt.f32 %v21_v7  ;;  %vm28_vm3 = vweird.f32 %v21_v7 }
  0x81   :  { %v114_v8 = vpop.eup %113 }
  0x82   :  { %v23_v9 = vmul.f32 %v114_v8, %v21_v7  ;;  %vm29_vm2 = vweird.f32 %v114_v8 }
  0x83   :  { %vm30_vm4 = vmor %vm28_vm3, %vm29_vm2 }
  0x84   :  { %v24_v10 = vmul.f32 %v114_v8, %v23_v9 }
  0x86   :  { %v25_v11 = vmul.f32 0.5, %v24_v10 }
  0x88   :  { %v26_v12 = vsub.f32 1.5, %v25_v11 }
  0x8a   :  { %v27_v13 = vmul.f32 %v114_v8, %v26_v12 }
  0x8b   :  { %v68_v19 = vpop.permute.xlu0 %67 }
  0x8c   :  { %v31_v14 = vsel %vm30_vm4, %v114_v8, %v27_v13  ;;  %vm69_vm7 = vcmp.eq.s32.totalorder %v68_v19, 1 }
  0x8d   :  { %v32_v15 = vmul.f32 %v31_v14, %v15_v0  ;;  %vm73_vm8 = vmand %vm69_vm7, %vm72_vm6 }
  0x8e   :  { %vm74_vm10 = vmand %vm62_vm9, %vm73_vm8 }
  0x8f   :  { %104 = vmatpush.xpose.msk.msra.mxu0 %vm17_vm0, %v32_v15 }
  0x92   :  { %105 = vmatmul.msk.f32.vlgmr.msra.gmra.mxu0 %vm17_vm0, %v32_v15 }
 0x10f   :  { %v53_v22 = vpop.f32.mrf.mxu0 }
 0x110   :  { %v75_v23 = vsel %vm74_vm10, %v53_v22, 0.0 }
 0x111   :  { %v77_v24 = vsel %vm76_vm11, %v75_v23, 0.0 }
 0x112   :  { %78 = vadd.xlane.f32.xlu1 %v77_v24 }
 0x185   :  { %v79_v25 = vpop.xlane.xlu1 %78 }
 0x186   :  { %v80_v26 = vrot.slane %v79_v25, 4 }
 0x188   :  { %v81_v27 = vadd.f32 %v80_v26, %v79_v25 }
 0x18a   :  { %v82_v28 = vrot.slane %v81_v27, 2 }
 0x18c   :  { %v83_v29 = vadd.f32 %v82_v28, %v81_v27 }
 0x18e   :  { %v84_v30 = vrot.slane %v83_v29, 1 }
 0x190   :  { %v85_v31 = vadd.f32 %v84_v30, %v83_v29 }
 0x192   :  { %106 = vpush %v85_v31 }
 0x1c3   :  { %s107_s20 = spop %106 }
 0x1c4   :  { %88 = sst [smem:[#allocation2]] %s107_s20 }
 0x1c5   :  { %97 = dma.smem_to_hbm %s130_s21, 16, %s95_s19, [#allocation3]  }
 0x1c6   :  { %127 = dma.done.wait [#allocation3], 16  }
 0x1c7   :  { %128 = vsyncadd [#allocation3], 4294967280 }
 0x1c8   :  { %102 = sfence }
 0x1c9   :  { %103 = vsyncpa [#allocation3], 1 }

</bundles_post_ra>
